<compile_context>
chip_gen: v7x
topology: tpu7x:2x2x1
jax: 0.10.0
libtpu: 0.0.40
codegen_flags: <defaults>
</compile_context>

<pallas_src>
import jax
import jax.numpy as jnp
from jax.experimental import pallas as pl
from jax.experimental.pallas import tpu as pltpu


# ---------------------------------------------------------------------------
# Problem sizes (small, consistent with an image-diffusion forward pass)
# ---------------------------------------------------------------------------
B, C, H, W = 2, 4, 16, 16          # x0: (B, C, H, W), PyTorch NCHW
HW = H * W                         # 256
BHW = B * HW                       # 512 -> lane-dense (multiple of 128)
HID = 32                           # eps_model hidden width
E = 8                              # time-embedding dim
T = 1000                           # diffusion steps
INV_N = 1.0 / float(B * C * HW)    # MSE mean divisor

# Packed-constants buffer layout (rows; every section start is 8-sublane aligned)
OFF_W1T = 0                        # (HID, C)   rows  0..31, cols 0..C
OFF_W2T = 32                       # (C, HID)   rows 32..35, cols 0..HID
OFF_TCOND = 40                     # (HID, BHW) rows 40..71   (temb@wt + b1, lane-broadcast)
OFF_B2 = 72                        # (C, BHW)   rows 72..75   (b2, lane-broadcast)
OFF_SAB = 80                       # (C, BHW)   rows 80..83   (sqrt_alpha_bars[t])
OFF_S1M = 88                       # (C, BHW)   rows 88..91   (sqrt(1-alpha_bars[t]))
P_ROWS = 96


# ---------------------------------------------------------------------------
# Schedule constants (pure JAX glue, mirrors precompute_schedule_constants)
# ---------------------------------------------------------------------------
def compute_beta_schedule_linear(T):
    scale = 1000.0 / T
    beta_1 = scale * 0.0001
    beta_T = scale * 0.02
    return jnp.linspace(beta_1, beta_T, T, dtype=jnp.float32)


def precompute_schedule_constants(betas):
    alphas = 1.0 - betas
    alpha_bars = jnp.exp(jnp.cumsum(jnp.log(alphas)))   # same as the PyTorch code
    return {
        "betas": betas,
        "alphas": alphas,
        "alpha_bars": alpha_bars,
        "sqrt_alpha_bars": jnp.sqrt(alpha_bars),
        "sqrt_one_minus_alpha_bars": jnp.sqrt(1.0 - alpha_bars),
    }


def sinusoidal_time_embedding(t, dim):
    half = dim // 2
    freqs = jnp.exp(-jnp.log(10000.0) * jnp.arange(half, dtype=jnp.float32) / half)
    args = t.astype(jnp.float32)[:, None] * freqs[None, :]
    return jnp.concatenate([jnp.sin(args), jnp.cos(args)], axis=-1)  # (B, dim)


# ---------------------------------------------------------------------------
# Pallas kernel: one invocation (no grid), whole problem resident in VMEM.
# ---------------------------------------------------------------------------
def ddpm_loss_kernel(xe_ref,       # VMEM (2, C, BHW): [x0, eps], batch folded on lanes
                     params_ref,   # VMEM (P_ROWS, BHW): packed constants (see OFF_*)
                     out_ref):     # VMEM (1, 1): final mean-squared-error loss
    x0f = xe_ref[0]                                         # (C, BHW)
    epsf = xe_ref[1]                                        # (C, BHW)

    # Static slices of the packed-constants ref (free views -> tiny loads).
    w1t = params_ref[OFF_W1T:OFF_W1T + HID, 0:C]            # (HID, C)
    w2t = params_ref[OFF_W2T:OFF_W2T + C, 0:HID]            # (C, HID)
    tcond = params_ref[OFF_TCOND:OFF_TCOND + HID, :]        # (HID, BHW)
    b2b = params_ref[OFF_B2:OFF_B2 + C, :]                  # (C, BHW)
    sab = params_ref[OFF_SAB:OFF_SAB + C, :]                # (C, BHW)
    s1m = params_ref[OFF_S1M:OFF_S1M + C, :]                # (C, BHW)

    # q-sample: x_t = sqrt_alpha_bar[t] * x0 + sqrt(1 - alpha_bar[t]) * eps
    x_t = sab * x0f + s1m * epsf                            # (C, BHW), pure VPU

    # eps_model: per-pixel MLP (1x1-conv style) with additive time conditioning.
    # One MXU dispatch per layer (batch folded into the 512-lane N dimension).
    h = jnp.dot(w1t, x_t, preferred_element_type=jnp.float32)       # (HID, BHW)
    h = jnp.maximum(h + tcond, 0.0)
    pred = jnp.dot(w2t, h, preferred_element_type=jnp.float32) + b2b  # (C, BHW)

    # MSE(eps, pred): full reduction in-kernel (XLU is idle), emit the scalar.
    d = pred - epsf
    d2 = d * d
    lane_sum = jnp.sum(d2, axis=1, keepdims=True)           # (C, 1)  lane reduce
    total = jnp.sum(lane_sum, axis=0, keepdims=True)        # (1, 1)  sublane reduce
    out_ref[...] = total * INV_N


@jax.jit
def ddpm_forward_loss(x0_nchw, eps_nchw, scales, tcond, w1, w2, b2):
    """scales: (B, 2) = [sqrt_alpha_bars[t], sqrt_one_minus_alpha_bars[t]]
       tcond:  (B, HID) = temb @ wt + b1 (hoisted time conditioning)."""
    # ---- layout plumbing (tiny one-off XLA ops; ~20 KiB total) --------------
    # NCHW already has H*W contiguous; fold the batch onto the lane axis.
    x0f = x0_nchw.reshape(B, C, HW).transpose(1, 0, 2).reshape(C, BHW)
    epsf = eps_nchw.reshape(B, C, HW).transpose(1, 0, 2).reshape(C, BHW)
    xe = jnp.stack([x0f, epsf])                              # (2, C, BHW)

    # Pre-broadcast every constant to a lane-dense row block (no in-kernel
    # broadcast_in_dim; JAX does not CSE those).
    tcond_rows = jnp.broadcast_to(tcond.T[:, :, None], (HID, B, HW)).reshape(HID, BHW)
    b2_rows = jnp.broadcast_to(b2.reshape(C, 1), (C, BHW))
    sab_rows = jnp.broadcast_to(jnp.repeat(scales[:, 0], HW)[None, :], (C, BHW))
    s1m_rows = jnp.broadcast_to(jnp.repeat(scales[:, 1], HW)[None, :], (C, BHW))

    params = jnp.zeros((P_ROWS, BHW), jnp.float32)
    params = params.at[OFF_W1T:OFF_W1T + HID, 0:C].set(w1.T)         # (HID, C)
    params = params.at[OFF_W2T:OFF_W2T + C, 0:HID].set(w2.T)         # (C, HID)
    params = params.at[OFF_TCOND:OFF_TCOND + HID, :].set(tcond_rows)
    params = params.at[OFF_B2:OFF_B2 + C, :].set(b2_rows)
    params = params.at[OFF_SAB:OFF_SAB + C, :].set(sab_rows)
    params = params.at[OFF_S1M:OFF_S1M + C, :].set(s1m_rows)

    vmem = pl.BlockSpec(memory_space=pltpu.MemorySpace.VMEM)
    loss2d = pl.pallas_call(
        ddpm_loss_kernel,
        out_shape=jax.ShapeDtypeStruct((1, 1), jnp.float32),
        in_specs=[vmem, vmem],
        out_specs=vmem,
    )(xe, params)
    # NOTE: at real DDPM sizes (larger C/H/W or a real eps_model) add an
    # HW-tiling grid axis marked "parallel" with per-tile partial outputs so
    # v7x's 2 TensorCores are both used, and size tiles against 64 MiB per-TC
    # VMEM (not 128 MiB) with double-buffering (2 bufs x each input) counted.
    return loss2d[0, 0]


# ---------------------------------------------------------------------------
# Pure-JAX reference for validation (same math, original weight layout)
# ---------------------------------------------------------------------------
def reference_loss(x0_nchw, eps_nchw, scales, temb, w1, wt, b1, w2, b2):
    x0 = x0_nchw.reshape(B, C, HW)
    eps = eps_nchw.reshape(B, C, HW)
    sab = scales[:, 0][:, None, None]
    s1mab = scales[:, 1][:, None, None]
    x_t = sab * x0 + s1mab * eps                                    # (B, C, HW)
    tcond = temb @ wt + b1                                          # (B, HID)
    h = jnp.einsum("bcp,cj->bjp", x_t, w1) + tcond[:, :, None]      # (B, HID, HW)
    h = jnp.maximum(h, 0.0)
    pred = jnp.einsum("bjp,jc->bcp", h, w2) + b2.reshape(C, 1)[None]  # (B, C, HW)
    return jnp.mean((pred - eps) ** 2)


if __name__ == "__main__":
    key = jax.random.PRNGKey(0)
    k_x0, k_t, k_eps, k_w1, k_wt, k_b1, k_w2, k_b2 = jax.random.split(key, 8)

    # Inputs (PyTorch NCHW convention)
    x0 = jax.random.normal(k_x0, (B, C, H, W), dtype=jnp.float32)

    # Schedule constants
    consts = precompute_schedule_constants(compute_beta_schedule_linear(T))

    # forward(): t ~ randint(0, T, (B,)), eps ~ randn_like(x0)
    t = jax.random.randint(k_t, (B,), 0, T)
    eps = jax.random.normal(k_eps, (B, C, H, W), dtype=jnp.float32)

    # Per-batch q-sample scalars gathered in glue.
    scales = jnp.stack(
        [consts["sqrt_alpha_bars"][t], consts["sqrt_one_minus_alpha_bars"][t]],
        axis=-1).astype(jnp.float32)                                 # (B, 2)

    # Synthetic eps_model parameters (deterministic).
    temb = sinusoidal_time_embedding(t, E)                           # (B, E)
    w1 = 0.1 * jax.random.normal(k_w1, (C, HID), dtype=jnp.float32)
    wt = 0.1 * jax.random.normal(k_wt, (E, HID), dtype=jnp.float32)
    b1 = 0.1 * jax.random.normal(k_b1, (1, HID), dtype=jnp.float32)
    w2 = 0.1 * jax.random.normal(k_w2, (HID, C), dtype=jnp.float32)
    b2 = 0.1 * jax.random.normal(k_b2, (1, C), dtype=jnp.float32)

    # One-off hoisted time conditioning (temb @ wt + b1), outside the hot path.
    tcond = (temb @ wt + b1).astype(jnp.float32)                     # (B, HID)

    loss = ddpm_forward_loss(x0, eps, scales, tcond, w1, w2, b2)
    loss = jax.block_until_ready(loss)

    ref = reference_loss(x0, eps, scales, temb, w1, wt, b1, w2, b2)
    assert jnp.allclose(loss, ref, rtol=1e-4, atol=1e-5), (loss, ref)

    print("KERNEL_OK")
</pallas_src>

<mosaic_0001>
module attributes {stable_mosaic.version = 11 : i64} {
  func.func @ddpm_loss_kernel(%arg0: memref<2x4x512xf32, #tpu.memory_space<vmem>>, %arg1: memref<96x512xf32, #tpu.memory_space<vmem>>, %arg2: memref<1x1xf32, #tpu.memory_space<vmem>>) attributes {dimension_semantics = [], scalar_prefetch = 0 : i64, scratch_operands = 0 : i64, tpu.core_type = #tpu.core_type<tc>} {
    %c0 = arith.constant 0 : index
    %c0_0 = arith.constant 0 : index
    %c0_1 = arith.constant 0 : index
    %0 = vector.load %arg0[%c0, %c0_0, %c0_1] : memref<2x4x512xf32, #tpu.memory_space<vmem>>, vector<1x4x512xf32>
    %1 = vector.shape_cast %0 : vector<1x4x512xf32> to vector<4x512xf32>
    %c1 = arith.constant 1 : index
    %c0_2 = arith.constant 0 : index
    %c0_3 = arith.constant 0 : index
    %2 = vector.load %arg0[%c1, %c0_2, %c0_3] : memref<2x4x512xf32, #tpu.memory_space<vmem>>, vector<1x4x512xf32>
    %3 = vector.shape_cast %2 : vector<1x4x512xf32> to vector<4x512xf32>
    %c0_4 = arith.constant 0 : index
    %c0_5 = arith.constant 0 : index
    %4 = vector.load %arg1[%c0_4, %c0_5] : memref<96x512xf32, #tpu.memory_space<vmem>>, vector<32x4xf32>
    %c32 = arith.constant 32 : index
    %c0_6 = arith.constant 0 : index
    %5 = vector.load %arg1[%c32, %c0_6] : memref<96x512xf32, #tpu.memory_space<vmem>>, vector<4x32xf32>
    %c40 = arith.constant 40 : index
    %c0_7 = arith.constant 0 : index
    %6 = vector.load %arg1[%c40, %c0_7] : memref<96x512xf32, #tpu.memory_space<vmem>>, vector<32x512xf32>
    %c72 = arith.constant 72 : index
    %c0_8 = arith.constant 0 : index
    %7 = vector.load %arg1[%c72, %c0_8] : memref<96x512xf32, #tpu.memory_space<vmem>>, vector<4x512xf32>
    %c80 = arith.constant 80 : index
    %c0_9 = arith.constant 0 : index
    %8 = vector.load %arg1[%c80, %c0_9] : memref<96x512xf32, #tpu.memory_space<vmem>>, vector<4x512xf32>
    %c88 = arith.constant 88 : index
    %c0_10 = arith.constant 0 : index
    %9 = vector.load %arg1[%c88, %c0_10] : memref<96x512xf32, #tpu.memory_space<vmem>>, vector<4x512xf32>
    %10 = arith.mulf %8, %1 : vector<4x512xf32>
    %11 = arith.mulf %9, %3 : vector<4x512xf32>
    %12 = arith.addf %10, %11 : vector<4x512xf32>
    %cst = arith.constant dense<0.000000e+00> : vector<32x512xf32>
    %13 = tpu.matmul %4, %12, %cst {dimension_numbers = #tpu.dot_dimension_numbers<[1], [0], [0], [1], [0, 0, 1, 1], [], []>} : vector<32x4xf32>, vector<4x512xf32>, vector<32x512xf32> -> vector<32x512xf32>
    %14 = arith.addf %13, %6 : vector<32x512xf32>
    %cst_11 = arith.constant 0.000000e+00 : f32
    %15 = vector.broadcast %cst_11 : f32 to vector<32x512xf32>
    %16 = arith.maximumf %14, %15 : vector<32x512xf32>
    %cst_12 = arith.constant dense<0.000000e+00> : vector<4x512xf32>
    %17 = tpu.matmul %5, %16, %cst_12 {dimension_numbers = #tpu.dot_dimension_numbers<[1], [0], [0], [1], [0, 0, 1, 1], [], []>} : vector<4x32xf32>, vector<32x512xf32>, vector<4x512xf32> -> vector<4x512xf32>
    %18 = arith.addf %17, %7 : vector<4x512xf32>
    %19 = arith.subf %18, %3 : vector<4x512xf32>
    %20 = arith.mulf %19, %19 : vector<4x512xf32>
    %cst_13 = arith.constant dense<0.000000e+00> : vector<4xf32>
    %21 = vector.multi_reduction <add>, %20, %cst_13 [1] : vector<4x512xf32> to vector<4xf32>
    %22 = vector.shape_cast %21 : vector<4xf32> to vector<4x1xf32>
    %cst_14 = arith.constant dense<0.000000e+00> : vector<1xf32>
    %23 = vector.multi_reduction <add>, %22, %cst_14 [0] : vector<4x1xf32> to vector<1xf32>
    %24 = vector.shape_cast %23 : vector<1xf32> to vector<1x1xf32>
    %cst_15 = arith.constant 4.8828125E-4 : f32
    %25 = vector.broadcast %cst_15 : f32 to vector<1x1xf32>
    %26 = arith.mulf %24, %25 : vector<1x1xf32>
    %c0_16 = arith.constant 0 : index
    %c0_17 = arith.constant 0 : index
    %27 = vector.load %arg2[%c0_16, %c0_17] : memref<1x1xf32, #tpu.memory_space<vmem>>, vector<1x1xf32>
    tpu.vector_store %arg2[%c0_16, %c0_17], %26 {strides = array<i32>} : memref<1x1xf32, #tpu.memory_space<vmem>>, vector<1x1xf32>,
    return
  }
}

</mosaic_0001>

<bundles_post_ra>
// kernel: ddpm_forward_loss.1
= control target key start
LH: loop header
LB: loop body
LE: loop exit
PB: predicated region body
PF: predicated region fallthrough
CT: control target
= control target key end

     0   :  { %vm87_vm0 = vcmask 1043456   ;;  %v543_v8 = vmov 0.0   ;;  %s720_s0 = inlined_call_operand.vmem [shape: f32[2,4,512], index: 0, kind: input, shape index: {}]   ;;  %s721_s1 = inlined_call_operand.vmem [shape: f32[96,512], index: 1, kind: input, shape index: {}]   ;;  %s722_s2 = inlined_call_operand.hbm [shape: f32[1,1], index: 2, kind: output, shape index: {}]  }
   0x1   :  { %v12_v0 = vld [vmem:[%s720_s0] sm:$0xff]  ;;  %v566_v1 = vld [vmem:[%s720_s0 + $0x10] sm:$0xff]  ;;  %v43_v2 = vld [vmem:[%s721_s1 + $0x148] sm:$0xf]  ;;  %164 = vmatprep.mubr.f32.mxu0 %v543_v8  ;;  %253 = vmatprep.mubr.f32.mxu1 %v543_v8 }
   0x2   :  { %v47_v3 = vld [vmem:[%s721_s1 + $0x168] sm:$0xf]  ;;  %v52_v4 = vcombine.high %v12_v0, %v12_v0  ;;  %v576_v5 = vcombine.high %v566_v1, %v566_v1  ;;  %v584_v7 = vld [vmem:[%s720_s0 + $0x18] sm:$0xff]  ;;  %v42_v13 = vld [vmem:[%s721_s1 + $0x140] sm:$0xf] }
   0x3   :  { %v13_v6 = vld [vmem:[%s720_s0 + $0x8] sm:$0xff]  ;;  %v45_v9 = vld [vmem:[%s721_s1 + $0x158] sm:$0xf]  ;;  %v594_v12 = vcombine.high %v584_v7, %v584_v7  ;;  %v46_v16 = vld [vmem:[%s721_s1 + $0x160] sm:$0xf]  ;;  %v56_v17 = vmul.f32 %v42_v13, %v12_v0 }
   0x4   :  { %v49_v10 = vld [vmem:[%s721_s1 + $0x178] sm:$0xf]  ;;  %v53_v11 = vcombine.high %v13_v6, %v13_v6  ;;  %v57_v14 = vmul.f32 %v52_v4, %v43_v2  ;;  %v67_v15 = vmul.f32 %v576_v5, %v47_v3  ;;  %v44_v18 = vld [vmem:[%s721_s1 + $0x150] sm:$0xf]  ;;  %v66_v22 = vmul.f32 %v566_v1, %v46_v16 }
   0x5   :  { %v48_v19 = vld [vmem:[%s721_s1 + $0x170] sm:$0xf]  ;;  %v69_v21 = vmul.f32 %v594_v12, %v49_v10  ;;  %v58_v23 = vmul.f32 %v44_v18, %v13_v6 }
   0x6   :  { %v59_v20 = vmul.f32 %v53_v11, %v45_v9  ;;  %v71_v24 = vadd.f32 %v67_v15, %v57_v14  ;;  %v68_v25 = vmul.f32 %v584_v7, %v48_v19 }
   0x7   :  { %7 = vsyncpa [#allocation3], 0  ;;  %v70_v27 = vadd.f32 %v66_v22, %v56_v17  ;;  %v17_v28 = vld [vmem:[%s721_s1] sm:$0xff]  ;;  %vm74_vm1 = vcmask 31744   ;;  %v24_v33 = vld [vmem:[%s721_s1 + $0xb0] sm:$0xff]  ;;  %vm294_vm2 = vcmask 261120  }
   0x8   :  { %v73_v26 = vadd.f32 %v69_v21, %v59_v20  ;;  %483 = vmatprep.subr.msk.mxu0 %vm87_vm0, %v71_v24  ;;  %v72_v29 = vadd.f32 %v68_v25, %v58_v23  ;;  %v18_v30 = vld [vmem:[%s721_s1 + $0x20] sm:$0xff]  ;;  %v23_v36 = vld [vmem:[%s721_s1 + $0xa8] sm:$0xff]  ;;  %v25_v40 = vld [vmem:[%s721_s1 + $0xb8] sm:$0xff]  ;;  %vm465_vm3 = vcmask 0  }
   0x9   :  { %484 = vmatpush1.msk.msra.mxu0 %vm87_vm0, %v70_v27  ;;  %v19_v31 = vld [vmem:[%s721_s1 + $0x40] sm:$0xff]  ;;  %v28_v44 = vld [vmem:[%s721_s1 + $0xd0] sm:$0xff]  ;;  %v27_v45 = vld [vmem:[%s721_s1 + $0xc8] sm:$0xff] }
   0xa   :  { %489 = vmatprep.subr.msk.mxu1 %vm87_vm0, %v73_v26  ;;  %485 = vmatmul.mubr.msk.f32.vlgmr.msra.gmra.mrb[0].mxu0 %vm74_vm1, %v17_v28  ;;  %v20_v32 = vld [vmem:[%s721_s1 + $0x60] sm:$0xff]  ;;  %v29_v48 = vld [vmem:[%s721_s1 + $0xd8] sm:$0xff]  ;;  %v32_v60 = vld [vmem:[%s721_s1 + $0xf0] sm:$0xff] }
   0xb   :  { %490 = vmatpush1.msk.msra.mxu1 %vm87_vm0, %v72_v29  ;;  %170 = vmatprep.mubr.f32.mxu0 %v543_v8  ;;  %v22_v34 = vld [vmem:[%s721_s1 + $0xa0] sm:$0xff]  ;;  %v33_v15 = vld [vmem:[%s721_s1 + $0xf8] sm:$0xff]  ;;  %v36_v20 = vld [vmem:[%s721_s1 + $0x110] sm:$0xff] }
   0xc   :  { %491 = vmatmul.mubr.msk.f32.vlgmr.msra.gmra.mrb[0].mxu1 %vm74_vm1, %v17_v28  ;;  %v26_v42 = vld [vmem:[%s721_s1 + $0xc0] sm:$0xff]  ;;  %v35_v21 = vld [vmem:[%s721_s1 + $0x108] sm:$0xff]  ;;  %v37_v24 = vld [vmem:[%s721_s1 + $0x118] sm:$0xff] }
   0xd   :  { %259 = vmatprep.mubr.f32.mxu1 %v543_v8  ;;  %v30_v0 = vld [vmem:[%s721_s1 + $0xe0] sm:$0xff] }
   0xe   :  { %486 = vmatmul.mubr.msk.f32.gmra.mrb[2].mxu0 %vm74_vm1, %v18_v30  ;;  %v34_v17 = vld [vmem:[%s721_s1 + $0x100] sm:$0xff] }
   0xf   :  { %176 = vmatprep.mubr.f32.mxu0 %v543_v8 }
  0x10   :  { %492 = vmatmul.mubr.msk.f32.gmra.mrb[2].mxu1 %vm74_vm1, %v18_v30 }
  0x11   :  { %265 = vmatprep.mubr.f32.mxu1 %v543_v8 }
  0x12   :  { %487 = vmatmul.mubr.msk.f32.gmra.mrb[4].mxu0 %vm74_vm1, %v19_v31 }
  0x13   :  { %182 = vmatprep.mubr.f32.mxu0 %v543_v8 }
  0x14   :  { %493 = vmatmul.mubr.msk.f32.gmra.mrb[4].mxu1 %vm74_vm1, %v19_v31 }
  0x15   :  { %271 = vmatprep.mubr.f32.mxu1 %v543_v8 }
  0x16   :  { %488 = vmatmul.mubr.msk.f32.gmra.mrb[6].mxu0 %vm74_vm1, %v20_v32 }
  0x17   :  { %362 = vmatprep.mubr.f32.mxu0 %v543_v8 }
  0x18   :  { %494 = vmatmul.mubr.msk.f32.gmra.mrb[6].mxu1 %vm74_vm1, %v20_v32 }
  0x19   :  { %433 = vmatprep.mubr.f32.mxu1 %v543_v8  ;;  %v31_v8 = vld [vmem:[%s721_s1 + $0xe8] sm:$0xff] }
  0xdd   :  { %v166_v35 = vpop.f32.mrb[0].mxu0 }
  0xde   :  { %v168_v37 = vpop.f32.mrb[1].mxu0  ;;  %v167_v43 = vadd.f32 %v166_v35, %v22_v34 }
  0xdf   :  { %v255_v38 = vpop.f32.mrb[0].mxu1  ;;  %v169_v46 = vadd.f32 %v168_v37, %v23_v36 }
  0xe0   :  { %v256_v39 = vadd.f32 %v255_v38, %v24_v33  ;;  %v257_v41 = vpop.f32.mrb[1].mxu1  ;;  %v278_v57 = vmax.f32 %v167_v43, 0.0 }
  0xe1   :  { %v172_v47 = vpop.f32.mrb[2].mxu0  ;;  %v258_v49 = vadd.f32 %v257_v41, %v25_v40  ;;  %v279_v61 = vmax.f32 %v169_v46, 0.0  ;;  %v38_v46 = vld [vmem:[%s721_s1 + $0x120] sm:$0xf] }
  0xe2   :  { %v173_v50 = vadd.f32 %v172_v47, %v26_v42  ;;  %v174_v52 = vpop.f32.mrb[3].mxu0  ;;  %v280_v53 = vmax.f32 %v256_v39, 0.0  ;;  %v39_v47 = vld [vmem:[%s721_s1 + $0x128] sm:$0xf] }
  0xe3   :  { %v261_v51 = vpop.f32.mrb[2].mxu1  ;;  %v175_v55 = vadd.f32 %v174_v52, %v27_v45  ;;  %v281_v3 = vmax.f32 %v258_v49, 0.0  ;;  %v21_v45 = vld [vmem:[%s721_s1 + $0x80] sm:$0xf] }
  0xe4   :  { %v262_v54 = vadd.f32 %v261_v51, %v28_v44  ;;  %v263_v56 = vpop.f32.mrb[3].mxu1  ;;  %v282_v58 = vmax.f32 %v173_v50, 0.0  ;;  %v41_v50 = vld [vmem:[%s721_s1 + $0x138] sm:$0xf] }
  0xe5   :  { %v264_v59 = vadd.f32 %v263_v56, %v29_v48  ;;  %v283_v63 = vmax.f32 %v175_v55, 0.0  ;;  %v178_v2 = vpop.f32.mrb[4].mxu0  ;;  %v40_v48 = vld [vmem:[%s721_s1 + $0x130] sm:$0xf]  ;;  %s544_s1 = smov [#allocation2]  }
  0xe6   :  { %v284_v62 = vmax.f32 %v262_v54, 0.0  ;;  %v499_v4 = vpack.c.bf16 %v282_v58, %v278_v57  ;;  %v180_v9 = vpop.f32.mrb[5].mxu0  ;;  %v179_v19 = vadd.f32 %v178_v2, %v30_v0  ;;  %s473_s25 = sshll.u32 %s544_s1, 4  ;;  %s474_s25 = int_to_ptr.vmem [resolvable:$true] %s473_s25 }
  0xe7   :  { %v285_v6 = vmax.f32 %v264_v59, 0.0  ;;  %v267_v10 = vpop.f32.mrb[4].mxu1  ;;  %v497_v13 = vpack.c.bf16 %v283_v63, %v279_v61  ;;  %v181_v22 = vadd.f32 %v180_v9, %v31_v8  ;;  %s519_s26 = scalar_lea.vmem %s474_s25, 16  ;;  %s523_s0 = scalar_lea.vmem %s474_s25, 32 }
  0xe8   :  { %v507_v11 = vpack.c.bf16 %v284_v62, %v280_v53  ;;  %v268_v14 = vadd.f32 %v267_v10, %v32_v60  ;;  %v269_v16 = vpop.f32.mrb[5].mxu1  ;;  %v286_v33 = vmax.f32 %v179_v19, 0.0  ;;  %p520_p0 = scmp.ne.s32.totalorder %s474_s25, %s519_s26  ;;  %p524_p1 = scmp.lt.s32.totalorder %s474_s25, %s474_s25 }
  0xe9   :  { %v505_v18 = vpack.c.bf16 %v285_v6, %v281_v3  ;;  %v184_v23 = vpop.f32.mrb[6].mxu0  ;;  %498 = vmatprep.subr.bf16.mxu0 %v497_v13  ;;  %v270_v25 = vadd.f32 %v269_v16, %v33_v15  ;;  %v287_v36 = vmax.f32 %v181_v22, 0.0  ;;  %p525_p2 = scmp.lt.s32.totalorder %s523_s0, %s519_s26 }
  0xea   :  { %v185_v26 = vadd.f32 %v184_v23, %v34_v17  ;;  %v186_v28 = vpop.f32.mrb[7].mxu0  ;;  %500 = vmatpush1.bf16.msra.mxu0 %v499_v4  ;;  %v288_v29 = vmax.f32 %v268_v14, 0.0 }
  0xeb   :  { %v273_v27 = vpop.f32.mrb[6].mxu1  ;;  %506 = vmatprep.subr.bf16.mxu1 %v505_v18  ;;  %v187_v31 = vadd.f32 %v186_v28, %v35_v21  ;;  %v289_v39 = vmax.f32 %v270_v25, 0.0  ;;  %p526_p3 = por %p525_p2, %p524_p1 }
  0xec   :  { %v274_v30 = vadd.f32 %v273_v27, %v36_v20  ;;  %v275_v32 = vpop.f32.mrb[7].mxu1  ;;  %508 = vmatpush1.bf16.msra.mxu1 %v507_v11  ;;  %v290_v34 = vmax.f32 %v185_v26, 0.0 }
  0xed   :  { %v276_v35 = vadd.f32 %v275_v32, %v37_v24  ;;  %v291_v38 = vmax.f32 %v187_v31, 0.0  ;;  %p527_p4 = pnand %p526_p3, %p520_p0 }
  0xee   :  { %v292_v37 = vmax.f32 %v274_v30, 0.0  ;;  %v503_v40 = vpack.c.bf16 %v290_v34, %v286_v33 }
  0xef   :  { %v293_v41 = vmax.f32 %v276_v35, 0.0  ;;  %v501_v43 = vpack.c.bf16 %v291_v38, %v287_v36 }
  0xf0   :  { %v511_v42 = vpack.c.bf16 %v292_v37, %v288_v29 }
  0xf1   :  { %v509_v44 = vpack.c.bf16 %v293_v41, %v289_v39  ;;  %502 = vmatprep.subr.bf16.mxu0 %v501_v43 }
  0xf2   :  { %504 = vmatpush1.bf16.msra.mxu0 %v503_v40 }
  0xf3   :  { %510 = vmatprep.subr.bf16.mxu1 %v509_v44 }
  0xf4   :  { %512 = vmatpush1.bf16.msra.mxu1 %v511_v42 }
  0xf5   :  { %495 = vmatmul.mubr.msk.f32.vlgmr.msra.gmra.mrb[8].mxu0 %vm294_vm2, %v21_v45 }
  0xf7   :  { %496 = vmatmul.mubr.msk.f32.vlgmr.msra.gmra.mrb[8].mxu1 %vm294_vm2, %v21_v45 }
 0x1c8   :  { %v364_v49 = vpop.f32.mrb[8].mxu0 }
 0x1c9   :  { %v365_v51 = vadd.f32 %v364_v49, %v38_v46  ;;  %v366_v52 = vpop.f32.mrb[9].mxu0 }
 0x1ca   :  { %v435_v53 = vpop.f32.mrb[8].mxu1  ;;  %v367_v54 = vadd.f32 %v366_v52, %v39_v47 }
 0x1cb   :  { %v436_v55 = vadd.f32 %v435_v53, %v40_v48  ;;  %v437_v56 = vpop.f32.mrb[9].mxu1  ;;  %v440_v57 = vsub.f32 %v365_v51, %v566_v1 }
 0x1cc   :  { %v438_v58 = vadd.f32 %v437_v56, %v41_v50  ;;  %v441_v59 = vsub.f32 %v367_v54, %v576_v5 }
 0x1cd   :  { %v442_v60 = vsub.f32 %v436_v55, %v584_v7  ;;  %v444_v61 = vmul.f32 %v440_v57, %v440_v57 }
 0x1ce   :  { %v443_v62 = vsub.f32 %v438_v58, %v594_v12  ;;  %v445_v63 = vmul.f32 %v441_v59, %v441_v59 }
 0x1cf   :  { %v446_v0 = vmul.f32 %v442_v60, %v442_v60  ;;  %v448_v2 = vsel %vm87_vm0, %v444_v61, 0.0 }
 0x1d0   :  { %v447_v3 = vmul.f32 %v443_v62, %v443_v62  ;;  %v449_v4 = vsel %vm87_vm0, %v445_v63, 0.0 }
 0x1d1   :  { %v451_v6 = vsel %vm87_vm0, %v446_v0, 0.0  ;;  %v450_v8 = vadd.f32 %v449_v4, %v448_v2 }
 0x1d2   :  { %v453_v1 = vsel %vm87_vm0, %v447_v3, 0.0 }
 0x1d3   :  { %v452_v9 = vadd.f32 %v451_v6, %v450_v8 }
 0x1d5   :  { %v454_v10 = vadd.f32 %v453_v1, %v452_v9 }
 0x1d7   :  { %455 = vadd.xlane.f32.xlu0 %v454_v10 }
 0x264   :  { %v456_v5 = vpop.xlane.xlu0 %455 }
 0x265   :  { %v457_v7 = vsel %vm87_vm0, %v456_v5, 0.0 }
 0x266   :  { %v458_v11 = vrot.slane %v457_v7, 4 }
 0x268   :  { %v459_v12 = vadd.f32 %v458_v11, %v457_v7 }
 0x26a   :  { %v460_v13 = vrot.slane %v459_v12, 2 }
 0x26c   :  { %v461_v14 = vadd.f32 %v460_v13, %v459_v12 }
 0x26e   :  { %v462_v15 = vrot.slane %v461_v14, 1 }
 0x270   :  { %v463_v16 = vadd.f32 %v462_v15, %v461_v14 }
 0x272   :  { %v464_v17 = vmul.f32 0.00048828125, %v463_v16 }
 0x274   :  { %466 = vst.msk [vmem:[#allocation2] sm:$0x1] %vm465_vm3, %v464_v17 }
 0x275   :  { %530 = shalt.err (!%p527_p4)
}
 0x276   :  { %s531_s29 = scalar_lea.hbm %s722_s2, 16 }
 0x277   :  { %p532_p5 = scmp.ne.s32.totalorder %s722_s2, %s531_s29  ;;  %p535_p6 = scmp.lt.u32.totalorder %s531_s29, %s722_s2 }
 0x279   :  { %p537_p7 = pnand %p535_p6, %p532_p5 }
 0x27b   :  { %540 = shalt.err (!%p537_p7)
}
 0x27c   :  { %476 = dma.vmem_to_hbm [thread:$0]  %s474_s25, 16, %s722_s2, [#allocation3]  }
 0x27d   :  { %541 = dma.done.wait [#allocation3], 16  }
 0x27e   :  { %542 = vsyncadd [#allocation3], 4294967280 }
 0x27f   :  { %480 = vsyncpa [#allocation3], 1 }

</bundles_post_ra>
